<compile_context>
chip_gen: v7x
topology: tpu7x:2x2x1
jax: 0.10.0
libtpu: 0.0.40
codegen_flags: <defaults>
</compile_context>

<pallas_src>
import functools

import jax
import jax.numpy as jnp
from jax.experimental import pallas as pl
from jax.experimental.pallas import tpu as pltpu


# 48 MiB: below v7x's 64 MiB physical VMEM (headroom for Mosaic internal
# scratch / double-buffers), comfortably inside v5e/v6e's 128 MiB.
_VMEM_LIMIT = 48 * 1024 * 1024


def _round_up(n, m):
    return ((n + m - 1) // m) * m


# -----------------------------------------------------------------------------
# Conv2d (3x3, pad=1, stride=1) + bias + ReLU with in-kernel im2col.
# -----------------------------------------------------------------------------
def _conv3x3_kernel(x_ref, w_ref, b_ref, o_ref, *, pw, n_pos):
    # x_ref: [1, Cin, PH*PW + 2] bf16  flat zero-padded frame (lane-dense rows)
    # w_ref: [Cout, 9*Cin]       bf16  tap-major / channel-minor weights
    # b_ref: [Cout, 1]           f32
    # o_ref: [1, Cout, n_pos]    bf16  full-width outputs (n_pos = OH*PW)
    xf = x_ref[0]                                    # [Cin, FLAT]
    slabs = []
    for ky in range(3):
        for kx in range(3):
            off = ky * pw + kx                       # static lane offset
            slabs.append(xf[:, off:off + n_pos])     # [Cin, n_pos]
    patches = jnp.concatenate(slabs, axis=0)         # [9*Cin, n_pos], in VMEM
    acc = jnp.dot(w_ref[...], patches, preferred_element_type=jnp.float32)
    o_ref[0] = jnp.maximum(acc + b_ref[...], 0.0).astype(o_ref.dtype)


def conv2d_relu(x, w, b, stride):
    """PyTorch-style Conv2d(kernel=3, padding=1, stride=stride) + ReLU.

    x: [B, Cin, H, W], w: [Cout, Cin, 3, 3], b: [Cout].
    Returns bf16 [B, Cout, OH, OW].
    """
    assert stride in (1, 2)
    B, Cin, H, W = x.shape
    Cout = w.shape[0]
    PH, PW = H + 2, W + 2
    NP = H * PW           # full-width positions of the stride-1 conv output
    FLAT = PH * PW + 2    # +2 so the (ky=2, kx=2) tap slice stays in-bounds

    # Pad + flatten is ~1x the input bytes (no 9x im2col materialization).
    xp = jnp.pad(x, ((0, 0), (0, 0), (1, 1), (1, 1)))
    xflat = jnp.pad(xp.reshape(B, Cin, PH * PW), ((0, 0), (0, 0), (0, 2)))
    xflat = xflat.astype(jnp.bfloat16)

    # Weight columns ordered (ky, kx) tap-major, channel-minor to match the
    # in-kernel patch row order.
    wmat = jnp.transpose(w, (0, 2, 3, 1)).reshape(Cout, 9 * Cin)
    wmat = wmat.astype(jnp.bfloat16)
    bcol = b.reshape(Cout, 1).astype(jnp.float32)

    kernel = functools.partial(_conv3x3_kernel, pw=PW, n_pos=NP)

    # TODO(synk): for large frames the resident padded frame + its
    # [9*Cin, OH*PW] patch block will not fit VMEM; add an output-row-band
    # loop with static per-band lane offsets inside the kernel.
    out = pl.pallas_call(
        kernel,
        out_shape=jax.ShapeDtypeStruct((B, Cout, NP), jnp.bfloat16),
        grid_spec=pltpu.PrefetchScalarGridSpec(
            num_scalar_prefetch=0,
            grid=(B,),
            in_specs=[
                pl.BlockSpec((1, Cin, FLAT), lambda bi: (bi, 0, 0)),
                pl.BlockSpec((Cout, 9 * Cin), lambda bi: (0, 0)),
                pl.BlockSpec((Cout, 1), lambda bi: (0, 0)),
            ],
            out_specs=pl.BlockSpec((1, Cout, NP), lambda bi: (bi, 0, 0)),
        ),
        compiler_params=pltpu.CompilerParams(
            dimension_semantics=("parallel",),
            vmem_limit_bytes=_VMEM_LIMIT,
        ),
    )(xflat, wmat, bcol)

    out = out.reshape(B, Cout, H, PW)[:, :, :, :W]   # drop the 2 wrap columns
    if stride == 1:
        return out
    # TODO(synk): stride-2 is realized as the stride-1 result subsampled on the
    # even grid (bit-exact for k=3/pad=1); a native space-to-depth stride-2
    # kernel would avoid the ~4x extra MXU work at production sizes.
    return out[:, :, ::2, ::2]


# -----------------------------------------------------------------------------
# Fused kernel: grid build + grid_sample (bilinear, border, align_corners=True)
# + L1 abs-sum, with a SEPARABLE bilinear operator per strip.
# -----------------------------------------------------------------------------
def _pick_strip(q_padded, per_col_bytes, budget_bytes=6 * 1024 * 1024, cap=512):
    """Largest multiple-of-128 divisor of q_padded (itself a multiple of 128)
    whose per-strip VMEM working set stays under budget_bytes."""
    max_cols = max(128, budget_bytes // max(per_col_bytes, 1))
    t = min(q_padded, cap, max_cols)
    t -= t % 128
    while t >= 128:
        if q_padded % t == 0:
            return t
        t -= 128
    return 128


def _warp_l1_kernel(prevT_ref, curr_ref, flow_ref, out_ref, *, fh, fw, q_valid):
    # prevT_ref: [1, C*fw, fh] bf16  prev features, x folded into rows, y on lanes
    # curr_ref : [1, C, TQ]    bf16  current-feature strip
    # flow_ref : [1, 2, TQ]    f32   resampled flow strip (feature resolution)
    # out_ref  : [1, 1, 1]     f32   per-batch abs-sum, accumulated over strips
    s = pl.program_id(1)
    C, TQ = curr_ref.shape[1], curr_ref.shape[2]
    col0 = s * TQ

    frx = flow_ref[0, 0:1, :]                         # [1, TQ]  x-flow
    fry = flow_ref[0, 1:2, :]                         # [1, TQ]  y-flow

    # Global output-pixel indices of this strip (+ tail-padding mask).
    p = jax.lax.broadcasted_iota(jnp.int32, (1, TQ), 1) + col0
    valid = (p < q_valid).astype(jnp.float32)         # [1, TQ]
    xo = (p % fw).astype(jnp.float32)
    yo = (p // fw).astype(jnp.float32)

    # Base grid: torch.linspace(-1, 1, size) (matches the PyTorch reference).
    if fw > 1:
        base_x = -1.0 + 2.0 * xo / float(fw - 1)
    else:
        base_x = jnp.full_like(xo, -1.0)
    if fh > 1:
        base_y = -1.0 + 2.0 * yo / float(fh - 1)
    else:
        base_y = jnp.full_like(yo, -1.0)

    # grid = base + flow / (feat_size / 2);  grid_sample unnormalize
    # (align_corners=True) + border padding (clamp).
    gx = base_x + frx / (fw / 2.0)
    gy = base_y + fry / (fh / 2.0)
    ix = jnp.clip((gx + 1.0) * 0.5 * (fw - 1), 0.0, float(fw - 1))
    iy = jnp.clip((gy + 1.0) * 0.5 * (fh - 1), 0.0, float(fh - 1))

    x0f = jnp.floor(ix)
    y0f = jnp.floor(iy)
    wx1 = ix - x0f
    wx0 = 1.0 - wx1
    wy1 = iy - y0f
    wy0 = 1.0 - wy1
    x0 = x0f.astype(jnp.int32)
    y0 = y0f.astype(jnp.int32)
    x1 = jnp.minimum(x0 + 1, fw - 1)
    y1 = jnp.minimum(y0 + 1, fh - 1)

    # Separable bilinear operators: O((fh+fw)*TQ) compares instead of the old
    # dense O(Q*TQ) matrix build.  All weight math stays f32 (v5e has no bf16
    # VALU); a single bf16 cast feeds the MXU.
    yio = jax.lax.broadcasted_iota(jnp.int32, (fh, TQ), 0)
    wy = (jnp.where(yio == y0, wy0, 0.0) + jnp.where(yio == y1, wy1, 0.0)) * valid
    xio = jax.lax.broadcasted_iota(jnp.int32, (fw, TQ), 0)
    wx = jnp.where(xio == x0, wx0, 0.0) + jnp.where(xio == x1, wx1, 0.0)

    # y-interpolation on the MXU, x-contraction on the VPU.
    t = jnp.dot(prevT_ref[0], wy.astype(jnp.bfloat16),
                preferred_element_type=jnp.float32)            # [C*fw, TQ] f32
    warped = jnp.sum(t.reshape(C, fw, TQ) * wx[None, :, :], axis=1)  # [C, TQ]
    ssum = jnp.sum(jnp.abs(warped - curr_ref[0].astype(jnp.float32)))

    @pl.when(s == 0)
    def _():
        out_ref[...] = jnp.zeros_like(out_ref)

    out_ref[...] = out_ref[...] + ssum


def warp_l1_abs_sum(prev_feat, curr_feat, flow_feat):
    """sum over b,c,y,x of |grid_sample(prev_feat, grid(flow)) - curr_feat|."""
    B, C, fh, fw = prev_feat.shape
    Q = fh * fw
    Qp = _round_up(Q, 128)

    # Per-output-column VMEM bytes: [C*fw,TQ] f32 intermediate + Wy/Wx strips
    # + curr/warped/flow strips.
    per_col = (C * fw + fh + fw) * 4 + C * 6 + 2 * 4
    TQ = _pick_strip(Qp, per_col)

    # prev with x folded into rows and y on the lane axis, so the y-interp is
    # one [C*fw, fh] @ [fh, TQ] MXU dot per strip.
    prevT = jnp.transpose(prev_feat, (0, 1, 3, 2)).reshape(B, C * fw, fh)
    prevT = prevT.astype(jnp.bfloat16)

    curr = curr_feat.reshape(B, C, Q).astype(jnp.bfloat16)
    flowf = flow_feat.reshape(B, 2, Q).astype(jnp.float32)
    if Qp != Q:
        curr = jnp.pad(curr, ((0, 0), (0, 0), (0, Qp - Q)))
        flowf = jnp.pad(flowf, ((0, 0), (0, 0), (0, Qp - Q)))

    kernel = functools.partial(_warp_l1_kernel, fh=fh, fw=fw, q_valid=Q)

    # TODO(synk): on v7x (2 TensorCores) a small/odd batch leaves a core idle;
    # splitting the strip axis into 2 parallel halves with per-half partial
    # sums would recover it.
    out = pl.pallas_call(
        kernel,
        out_shape=jax.ShapeDtypeStruct((B, 1, 1), jnp.float32),
        grid_spec=pltpu.PrefetchScalarGridSpec(
            num_scalar_prefetch=0,
            grid=(B, Qp // TQ),
            in_specs=[
                pl.BlockSpec((1, C * fw, fh), lambda bi, si: (bi, 0, 0)),
                pl.BlockSpec((1, C, TQ), lambda bi, si: (bi, 0, si)),
                pl.BlockSpec((1, 2, TQ), lambda bi, si: (bi, 0, si)),
            ],
            out_specs=pl.BlockSpec((1, 1, 1), lambda bi, si: (bi, 0, 0)),
        ),
        compiler_params=pltpu.CompilerParams(
            dimension_semantics=("parallel", "arbitrary"),
            vmem_limit_bytes=_VMEM_LIMIT,
        ),
    )(prevT, curr, flowf)
    # Per-batch partials (batch axis parallel); reduce in glue.
    return jnp.sum(out)


# -----------------------------------------------------------------------------
# Glue: 1-D bilinear resize operator (F.interpolate, align_corners=False).
# -----------------------------------------------------------------------------
def _resize_matrix(out_size, in_size):
    o = jnp.arange(out_size, dtype=jnp.float32)
    scale = in_size / out_size
    src = jnp.maximum((o + 0.5) * scale - 0.5, 0.0)
    i0 = jnp.clip(jnp.floor(src).astype(jnp.int32), 0, in_size - 1)
    i1 = jnp.minimum(i0 + 1, in_size - 1)
    w1 = src - i0.astype(jnp.float32)
    w0 = 1.0 - w1
    oh0 = jax.nn.one_hot(i0, in_size, dtype=jnp.float32) * w0[:, None]
    oh1 = jax.nn.one_hot(i1, in_size, dtype=jnp.float32) * w1[:, None]
    return oh0 + oh1  # [out_size, in_size]


# -----------------------------------------------------------------------------
# Synthetic deterministic feature extractor (2 conv+relu stages, Pallas convs).
# -----------------------------------------------------------------------------
class SimpleFeatureExtractor:
    def __init__(self, key, cin, c1, c2):
        k1, k2, k3, k4 = jax.random.split(key, 4)
        self.w1 = 0.1 * jax.random.normal(k1, (c1, cin, 3, 3), jnp.float32)
        self.b1 = 0.1 * jax.random.normal(k2, (c1,), jnp.float32)
        self.w2 = 0.1 * jax.random.normal(k3, (c2, c1, 3, 3), jnp.float32)
        self.b2 = 0.1 * jax.random.normal(k4, (c2,), jnp.float32)

    def __call__(self, x):
        f1 = conv2d_relu(x, self.w1, self.b1, stride=1)   # [B, c1, H, W]   bf16
        f2 = conv2d_relu(f1, self.w2, self.b2, stride=2)  # [B, c2, H/2, W/2]
        return {"layer1": f1, "layer2": f2}


# -----------------------------------------------------------------------------
# FeatureTemporalLoss (forward semantics of the PyTorch module).
# -----------------------------------------------------------------------------
class FeatureTemporalLossPallas:
    def __init__(self, feature_extractor, layers, weights=None, reduction="mean"):
        self.feature_extractor = feature_extractor
        self.layers = layers
        self.reduction = reduction
        self.layer_weights = {}
        if weights is not None:
            for i, layer in enumerate(layers):
                self.layer_weights[layer] = weights[i]
        else:
            for layer in layers:
                self.layer_weights[layer] = 1.0 / len(layers)

    def __call__(self, prev_frame, curr_frame, flow):
        B, _, H, W = prev_frame.shape

        # Single extractor pass over the concatenated batch (2B): half the
        # pallas_call launches, conv weights fetched once, fuller pipeline.
        frames = jnp.concatenate([prev_frame, curr_frame], axis=0)
        feats = self.feature_extractor(frames)

        total_loss = jnp.float32(0.0)
        for layer in self.layers:
            f = feats[layer]
            pf, cf = f[:B], f[B:]
            _, C, fh, fw = pf.shape
            Q = fh * fw

            # Separable bilinear flow resize (align_corners=False), XLA glue.
            rw = _resize_matrix(fw, W)  # [fw, W]
            rh = _resize_matrix(fh, H)  # [fh, H]
            fr = jnp.einsum("bchw,fw->bchf", flow, rw)
            fr = jnp.einsum("bchf,gh->bcgf", fr, rh)      # [B, 2, fh, fw]

            abs_sum = warp_l1_abs_sum(pf, cf, fr)

            if self.reduction == "mean":
                layer_loss = abs_sum / (B * C * Q)
            elif self.reduction == "sum":
                layer_loss = abs_sum
            else:
                # TODO(synk): reduction='none' returns a per-element tensor; not
                # representable by this scalar-accumulating kernel.
                raise NotImplementedError("reduction='none' not supported")

            total_loss = total_loss + self.layer_weights[layer] * layer_loss
        return total_loss


if __name__ == "__main__":
    key = jax.random.PRNGKey(0)
    k_prev, k_curr, k_flow, k_weights = jax.random.split(key, 4)

    # 32x32 frames: layer1 -> Q=1024 (2 strips of 512, accumulation path
    # exercised), layer2 -> Q=256 (single strip).
    B, C, H, W = 2, 3, 32, 32
    prev_frame = jax.random.normal(k_prev, (B, C, H, W), jnp.float32)
    curr_frame = jax.random.normal(k_curr, (B, C, H, W), jnp.float32)
    flow = 2.0 * jax.random.normal(k_flow, (B, 2, H, W), jnp.float32)

    feature_extractor = SimpleFeatureExtractor(k_weights, cin=C, c1=8, c2=16)
    loss_mod = FeatureTemporalLossPallas(
        feature_extractor, layers=["layer1", "layer2"], weights=None, reduction="mean"
    )

    loss = loss_mod(prev_frame, curr_frame, flow)
    jax.block_until_ready(loss)
    print("KERNEL_OK")
</pallas_src>

<mosaic_0001>
module attributes {stable_mosaic.version = 11 : i64} {
  func.func @_conv3x3_kernel(%arg0: i32, %arg1: memref<1x3x1158xbf16, #tpu.memory_space<vmem>>, %arg2: memref<8x27xbf16, #tpu.memory_space<vmem>>, %arg3: memref<8x1xf32, #tpu.memory_space<vmem>>, %arg4: memref<1x8x1088xbf16, #tpu.memory_space<vmem>>) attributes {dimension_semantics = [#tpu.dimension_semantics<parallel>], iteration_bounds = array<i64: 4>, scalar_prefetch = 0 : i64, scratch_operands = 0 : i64, tpu.core_type = #tpu.core_type<tc>, window_params = [{transform_indices = @transform_0, window_bounds = array<i64: 1, 3, 1158>}, {pipeline_mode = #tpu.pipeline_mode<synchronous>, transform_indices = @transform_1, window_bounds = array<i64: 8, 27>}, {pipeline_mode = #tpu.pipeline_mode<synchronous>, transform_indices = @transform_2, window_bounds = array<i64: 8, 1>}, {transform_indices = @transform_3, window_bounds = array<i64: 1, 8, 1088>}]} {
    %c0 = arith.constant 0 : index
    %c0_0 = arith.constant 0 : index
    %c0_1 = arith.constant 0 : index
    %0 = vector.load %arg1[%c0, %c0_0, %c0_1] : memref<1x3x1158xbf16, #tpu.memory_space<vmem>>, vector<1x3x1158xbf16>
    %1 = vector.shape_cast %0 : vector<1x3x1158xbf16> to vector<3x1158xbf16>
    %2 = vector.extract_strided_slice %1 {offsets = [0, 0], sizes = [3, 1088], strides = [1, 1]} : vector<3x1158xbf16> to vector<3x1088xbf16>
    %3 = vector.extract_strided_slice %1 {offsets = [0, 1], sizes = [3, 1088], strides = [1, 1]} : vector<3x1158xbf16> to vector<3x1088xbf16>
    %4 = vector.extract_strided_slice %1 {offsets = [0, 2], sizes = [3, 1088], strides = [1, 1]} : vector<3x1158xbf16> to vector<3x1088xbf16>
    %5 = vector.extract_strided_slice %1 {offsets = [0, 34], sizes = [3, 1088], strides = [1, 1]} : vector<3x1158xbf16> to vector<3x1088xbf16>
    %6 = vector.extract_strided_slice %1 {offsets = [0, 35], sizes = [3, 1088], strides = [1, 1]} : vector<3x1158xbf16> to vector<3x1088xbf16>
    %7 = vector.extract_strided_slice %1 {offsets = [0, 36], sizes = [3, 1088], strides = [1, 1]} : vector<3x1158xbf16> to vector<3x1088xbf16>
    %8 = vector.extract_strided_slice %1 {offsets = [0, 68], sizes = [3, 1088], strides = [1, 1]} : vector<3x1158xbf16> to vector<3x1088xbf16>
    %9 = vector.extract_strided_slice %1 {offsets = [0, 69], sizes = [3, 1088], strides = [1, 1]} : vector<3x1158xbf16> to vector<3x1088xbf16>
    %10 = vector.extract_strided_slice %1 {offsets = [0, 70], sizes = [3, 1088], strides = [1, 1]} : vector<3x1158xbf16> to vector<3x1088xbf16>
    %11 = tpu.concatenate %2, %3, %4, %5, %6, %7, %8, %9, %10 in 0 : vector<3x1088xbf16>, vector<3x1088xbf16>, vector<3x1088xbf16>, vector<3x1088xbf16>, vector<3x1088xbf16>, vector<3x1088xbf16>, vector<3x1088xbf16>, vector<3x1088xbf16>, vector<3x1088xbf16> -> vector<27x1088xbf16>
    %c0_2 = arith.constant 0 : index
    %c0_3 = arith.constant 0 : index
    %12 = vector.load %arg2[%c0_2, %c0_3] : memref<8x27xbf16, #tpu.memory_space<vmem>>, vector<8x27xbf16>
    %cst = arith.constant dense<0.000000e+00> : vector<8x1088xf32>
    %13 = tpu.matmul %12, %11, %cst {dimension_numbers = #tpu.dot_dimension_numbers<[1], [0], [0], [1], [0, 0, 1, 1], [], []>} : vector<8x27xbf16>, vector<27x1088xbf16>, vector<8x1088xf32> -> vector<8x1088xf32>
    %c0_4 = arith.constant 0 : index
    %c0_5 = arith.constant 0 : index
    %14 = vector.load %arg3[%c0_4, %c0_5] : memref<8x1xf32, #tpu.memory_space<vmem>>, vector<8x1xf32>
    %15 = vector.broadcast %14 : vector<8x1xf32> to vector<8x1088xf32>
    %16 = arith.addf %13, %15 : vector<8x1088xf32>
    %cst_6 = arith.constant 0.000000e+00 : f32
    %17 = vector.broadcast %cst_6 : f32 to vector<8x1088xf32>
    %18 = arith.maximumf %16, %17 : vector<8x1088xf32>
    %19 = arith.truncf %18 : vector<8x1088xf32> to vector<8x1088xbf16>
    %c0_7 = arith.constant 0 : index
    %c0_8 = arith.constant 0 : index
    %c0_9 = arith.constant 0 : index
    %20 = vector.load %arg4[%c0_7, %c0_8, %c0_9] : memref<1x8x1088xbf16, #tpu.memory_space<vmem>>, vector<1x8x1088xbf16>
    %21 = vector.shape_cast %20 : vector<1x8x1088xbf16> to vector<8x1088xbf16>
    %22 = vector.shape_cast %19 : vector<8x1088xbf16> to vector<1x8x1088xbf16>
    tpu.vector_store %arg4[%c0_7, %c0_8, %c0_9], %22 {strides = array<i32>} : memref<1x8x1088xbf16, #tpu.memory_space<vmem>>, vector<1x8x1088xbf16>,
    return
  }
  func.func @transform_0(%arg0: i32) -> (i32, i32, i32) {
    %c0_i32 = arith.constant 0 : i32
    %c0_i32_0 = arith.constant 0 : i32
    %c0_i32_1 = arith.constant 0 : i32
    return %arg0, %c0_i32, %c0_i32_0 : i32, i32, i32
  }
  func.func @transform_1(%arg0: i32) -> (i32, i32) {
    %c0_i32 = arith.constant 0 : i32
    %c0_i32_0 = arith.constant 0 : i32
    %c0_i32_1 = arith.constant 0 : i32
    return %c0_i32, %c0_i32_0 : i32, i32
  }
  func.func @transform_2(%arg0: i32) -> (i32, i32) {
    %c0_i32 = arith.constant 0 : i32
    %c0_i32_0 = arith.constant 0 : i32
    %c0_i32_1 = arith.constant 0 : i32
    return %c0_i32, %c0_i32_0 : i32, i32
  }
  func.func @transform_3(%arg0: i32) -> (i32, i32, i32) {
    %c0_i32 = arith.constant 0 : i32
    %c0_i32_0 = arith.constant 0 : i32
    %c0_i32_1 = arith.constant 0 : i32
    return %arg0, %c0_i32, %c0_i32_0 : i32, i32, i32
  }
}

</mosaic_0001>

<bundles_post_ra>
// kernel: tpu_custom_call.1
= control target key start
LH: loop header
LB: loop body
LE: loop exit
PB: predicated region body
PF: predicated region fallthrough
CT: control target
= control target key end

     0   :  { %8 = vsyncpa [#allocation3], 0  ;;  %s2259_s0 = inlined_call_operand.vmem [shape: bf16[4,3,1158], index: 0, kind: input, shape index: {}]   ;;  %s2260_s1 = inlined_call_operand.vmem [shape: bf16[8,27], index: 1, kind: input, shape index: {}]   ;;  %s2261_s2 = inlined_call_operand.vmem [shape: f32[8,1], index: 2, kind: input, shape index: {}]   ;;  %s2262_s3 = inlined_call_operand.hbm [shape: bf16[4,8,1088], index: 3, kind: output, shape index: {}]  }
   0x1   :  { %10 = vsyncpa [#allocation3 + $0x1], 0  ;;  %s1479_s12 = smov 0   ;;  %s1481_s13 = smov 0  }
   0x2   :  { %s1483_s14 = smov 0   ;;  %s1485_s15 = smov 0  }
   0x3 LB: > { %s1500_s16 = sadd.s32 4294967295, %s1443_s15   ;;  %s1266_s17 = sadd.s32 4294967294, %s1443_s15   ;;  %s1443_s15 = sphi %s1485_s15, %s2302_s15   ;;  %s1439_s14 = sphi %s1483_s14, %s2301_s14   ;;  %s1435_s13 = sphi %s1481_s13, %s2300_s13   ;;  %s1431_s12 = sphi %s1479_s12, %s2299_s12  }
   0x4   : > { %s1504_s18 = sadd.s32 1, %s1443_s15   ;;  %s91_s19 = sadd.s32 1, %s1439_s14 }
   0x5   : > { %s88_s20 = ssub.s32 %s1443_s15, %s1504_s18  ;;  %p101_p0 = scmp.ne.s32.totalorder %s1439_s14, %s1435_s13 }
   0x6   : > { %p89_p1 = scmp.eq.s32.totalorder %s88_s20, 0  ;;  %p102_p2 = scmp.eq.s32.totalorder %s1500_s16, 3 }
   0x7   : > { %p107_p3 = scmp.ne.s32.totalorder %s1435_s13, %s1431_s12  ;;  %p108_p4 = scmp.eq.s32.totalorder %s1266_s17, 3 }
   0x8   : > { %s1515_s21 = scalar_select %p89_p1, %s1439_s14, %s91_s19  }
   0x9   : > { %p1517_p5 = por %p102_p2, %p101_p0  ;;  %p1521_p6 = por %p108_p4, %p107_p3 }
   0xa   : > { %p1269_p7 = scmp.ge.s32.totalorder %s1443_s15, 1  ;;  %p140_p8 = scmp.lt.s32.totalorder %s1443_s15, 5 }
   0xc   : > { %p141_p9 = pnand %p1269_p7, %p140_p8 }
   0xd   : > { %p164_p10 = scmp.lt.s32.totalorder (!%p141_p9), %s1500_s16, 3  ;;  %v180_v0 = vlaneseq (!%p141_p9)  ;;  %v1445_v1 = vmov (!%p141_p9), 1983009808   ;;  %s1446_s29 = smov (!%p141_p9), 126   ;;  %vm316_vm0 = vcmask (!%p141_p9), 1039360   ;;  %vm717_vm1 = vcmask (!%p141_p9), 1041408  }
   0xe   : > { %144 = sbr.rel (%p141_p9) target bundleno = 544 (0x220), region = 32  ;;  %v178_v2 = vunpack.c.l.s4 (!%p141_p9), %v1445_v1  ;;  %s1447_s30 = smov (!%p141_p9), 93   ;;  %vm718_vm2 = vsmask.f32 (!%p141_p9), 1280  ;;  %vm2264_vm3 = vcmask (!%p141_p9), 769024   ;;  %vm766_vm4 = vcmask (!%p141_p9), 1044480  }
   0xf   : > { %v181_v3 = vshrl.u32 (!%p141_p9), %v180_v0, 7  ;;  %s1448_s4 = smov (!%p141_p9), 94   ;;  %s1449_s5 = smov (!%p141_p9), 127   ;;  %vm767_vm5 = vsmask.f32 (!%p141_p9), 4352  ;;  %vm361_vm6 = vcmask (!%p141_p9), 1031168   ;;  %vm1845_vm7 = vmand (!%p141_p9), %vm717_vm1, %vm718_vm2 }
  0x10   : > { %v179_v4 = vunpack.c.0.s8 (!%p141_p9), %v178_v2  ;;  %s1450_s6 = smov (!%p141_p9), 92   ;;  %s1451_s7 = smov (!%p141_p9), 60   ;;  %vm729_vm8 = vcmask (!%p141_p9), 1042432   ;;  %vm2263_vm9 = vcmask (!%p141_p9), 760832   ;;  %vm815_vm10 = vcmask (!%p141_p9), 1047552   ;;  %vm1859_vm12 = vmand (!%p141_p9), %vm766_vm4, %vm767_vm5 }
  0x11   : > { %s1452_s8 = smov (!%p141_p9), 59   ;;  %s1453_s9 = smov (!%p141_p9), 58   ;;  %vm816_vm11 = vsmask.f32 (!%p141_p9), 7424  ;;  %vm543_vm13 = vcmask (!%p141_p9), 752640   ;;  %vm778_vm14 = vcmask (!%p141_p9), 1045504  }
  0x12   : > { %v1529_v5 = vsub.s32 (!%p141_p9), %v179_v4, %v181_v3  ;;  %vm1881_vm15 = vmand (!%p141_p9), %vm815_vm10, %vm816_vm11  ;;  %vm600_vm1 = vcmask (!%p141_p9), 490496   ;;  %vm665_vm2 = vcmask (!%p141_p9), 482304   ;;  %vm865_vm5 = vsmask.f32 (!%p141_p9), 2304  ;;  %s161_s20 = sand.u32 (!%p141_p9), 1, %s1435_s13   ;;  %s1302_s26 = smul.u32 (!%p141_p9), 576, %s1500_s16 }
  0x13   : > { %vm827_vm10 = vcmask (!%p141_p9), 1040384   ;;  %vm1945_vm11 = vmand (!%p141_p9), %vm729_vm8, %vm865_vm5  ;;  %vm2277_vm5 = vcmask (!%p141_p9), 769024  }
  0x15   : > { %s165_s24 = scalar_select %p164_p10, %s1500_s16, 3 }
  0x16   : > { %s1193_s16 = scalar_lea.sflag [#allocation3], %s161_s20 }
  0x17   : > { %s1301_s25 = smul.u32 20, %s165_s24 }
  0x18   : > { %s1300_s24 = smul.u32 36, %s161_s20 }
  0x19   : > { %s1534_s28 = scalar_lea.vmem %s2259_s0, %s1301_s25 }
  0x1a   : > { %v170_v6 = vld [vmem:[%s1534_s28] sm:$0xff]  ;;  %v1538_v7 = vld [vmem:[%s1534_s28 + $0x10] sm:$0xf]  ;;  %v1631_v59 = vld [vmem:[%s1534_s28 + $0x8] sm:$0xff]  ;;  %s2203_s25 = scalar_lea.vmem [#allocation2], %s1300_s24 }
  0x1b   : > { %v1541_v8 = vrot.slane %v170_v6, %v1529_v5  ;;  %v176_v9 = vcombine.high %v170_v6, %v170_v6  ;;  %v433_v10 = vcombine.low %v170_v6, %v170_v6  ;;  %v1545_v11 = vrot.slane %v1538_v7, %v1529_v5  ;;  %s1207_s27 = sshll.u32 %s2203_s25, 4  ;;  %s2216_s27 = int_to_ptr.vmem [resolvable:$true] %s1207_s27 }
  0x1c   : > { %v453_v63 = vcombine.low %v1538_v7, %v1538_v7  ;;  %v193_v2 = vcombine.high %v1631_v59, %v1631_v59  ;;  %v1650_v4 = vrot.slane %v1631_v59, %v1529_v5 }
  0x1d   : > { %v334_v12 = vrot.slane %v1541_v8, 5  ;;  %v1549_v13 = vrot.slane %v176_v9, %v1529_v5  ;;  %v1552_v14 = vshrl.u32 %v1541_v8, 16  ;;  %v1555_v15 = vshll.u32 %v1541_v8, 16 }
  0x1e   : > { %v1559_v16 = vcombine.high %v1541_v8, %v1541_v8  ;;  %v440_v18 = vrot.slane %v433_v10, %v1529_v5  ;;  %v1605_v45 = vcombine.low %v1541_v8, %v1541_v8  ;;  %v570_v56 = vrot.slane %v1541_v8, 7 }
  0x1f   : > { %343 = vrot.lane.b32.xlu1 %v334_v12, %s1446_s29  ;;  %v336_v17 = vrot.slane %v1549_v13, 5  ;;  %v370_v19 = vrot.slane %v1552_v14, 3  ;;  %v371_v20 = vrot.slane %v1555_v15, 4  ;;  %v1574_v23 = vshrl.u32 %v1549_v13, 16 }
  0x20   : > { %v1567_v21 = vshrl.u32 %v1559_v16, 16  ;;  %v1570_v22 = vshll.u32 %v1559_v16, 16  ;;  %v1577_v24 = vshll.u32 %v1549_v13, 16  ;;  %v335_v28 = vrot.slane %v1559_v16, 5 }
  0x21   : > { %347 = vrot.lane.b32.xlu0 %v336_v17, %s1446_s29  ;;  %v372_v25 = vor.u32 %v371_v20, %v370_v19  ;;  %v229_v29 = vrot.slane %v1552_v14, 6  ;;  %v232_v30 = vrot.slane %v1555_v15, 7  ;;  %v245_v32 = vrot.slane %v1574_v23, 6 }
  0x22   : > { %v237_v26 = vrot.slane %v1567_v21, 6  ;;  %v240_v27 = vrot.slane %v1570_v22, 7  ;;  %v248_v33 = vrot.slane %v1577_v24, 7  ;;  %v376_v35 = vrot.slane %v1574_v23, 3 }
  0x23   : > { %464 = vrot.lane.b32.xlu1 %v440_v18, %s1447_s30  ;;  %v233_v34 = vor.u32 %v232_v30, %v229_v29  ;;  %v377_v36 = vrot.slane %v1577_v24, 4  ;;  %v373_v38 = vrot.slane %v1567_v21, 3  ;;  %v374_v39 = vrot.slane %v1570_v22, 4 }
  0x24   : > { %v241_v31 = vor.u32 %v240_v27, %v237_v26  ;;  %v249_v37 = vor.u32 %v248_v33, %v245_v32  ;;  %v441_v42 = vcombine.low %v440_v18, %v440_v18  ;;  %v490_v43 = vrot.slane %v1570_v22, 1 }
  0x25   : > { %397 = vrot.lane.b32.xlu0 %v372_v25, %s1448_s4  ;;  %v378_v40 = vor.u32 %v377_v36, %v376_v35  ;;  %v375_v41 = vor.u32 %v374_v39, %v373_v38  ;;  %v1600_v44 = vcombine.high %v1549_v13, %v1549_v13  ;;  %v491_v46 = vrot.slane %v1577_v24, 1 }
  0x26   : > { %v499_v47 = vor.u32 %v490_v43, %v1567_v21  ;;  %v571_v50 = vrot.slane %v1559_v16, 7  ;;  %v489_v51 = vrot.slane %v1555_v15, 1  ;;  %v572_v55 = vrot.slane %v1549_v13, 7 }
  0x27   : > { %345 = vrot.lane.b32.xlu1 %v335_v28, %s1446_s29  ;;  %v1611_v48 = vshll.u32 %v1600_v44, 16  ;;  %v1355_v49 = vpack.i.bf16 %v491_v46, %v490_v43  ;;  %v500_v53 = vor.u32 %v491_v46, %v1574_v23  ;;  %v616_v57 = vrot.slane %v1574_v23, 5 }
  0x28   : > { %v617_v58 = vrot.slane %v1577_v24, 6  ;;  %v498_v60 = vor.u32 %v489_v51, %v1552_v14  ;;  %v613_v61 = vrot.slane %v1567_v21, 5  ;;  %v614_v62 = vrot.slane %v1570_v22, 6 }
  0x29   : > { %300 = vrot.lane.b32.xlu0 %v241_v31, %s1449_s5  ;;  %v492_v52 = vrot.slane %v1611_v48, 1  ;;  %v1641_v1 = vshrl.u32 %v1600_v44, 16  ;;  %v1646_v3 = vrot.slane %v453_v63, %v1529_v5  ;;  %v610_v7 = vrot.slane %v1552_v14, 5 }
  0x2a   : > { %v618_v0 = vor.u32 %v617_v58, %v616_v57  ;;  %v615_v6 = vor.u32 %v614_v62, %v613_v61  ;;  %v611_v9 = vrot.slane %v1555_v15, 6  ;;  %v256_v12 = vrot.slane %v1611_v48, 7 }
  0x2b   : > { %298 = vrot.lane.b32.xlu1 %v233_v34, %s1449_s5  ;;  %v1360_v54 = vpack.i.bf16 %v492_v52, %v489_v51  ;;  %v253_v10 = vrot.slane %v1641_v1, 6  ;;  %v1659_v17 = vrot.slane %v193_v2, %v1529_v5  ;;  %v1663_v19 = vshrl.u32 %v1650_v4, 16 }
  0x2c   : > { %v612_v18 = vor.u32 %v611_v9, %v610_v7  ;;  %v1666_v14 = vshll.u32 %v1650_v4, 16  ;;  %v1670_v15 = vcombine.high %v1650_v4, %v1650_v4  ;;  %v684_v23 = vcombine.low %v1549_v13, %v1549_v13 }
  0x2d   : > { %302 = vrot.lane.b32.xlu0 %v249_v37, %s1449_s5  ;;  %v257_v20 = vor.u32 %v256_v12, %v253_v10  ;;  %v1675_v21 = vshrl.u32 %v1659_v17, 16  ;;  %v1678_v22 = vshll.u32 %v1659_v17, 16  ;;  %v261_v24 = vrot.slane %v1663_v19, 6 }
  0x2e   : > { %v264_v25 = vrot.slane %v1666_v14, 7  ;;  %v1686_v26 = vshrl.u32 %v1670_v15, 16  ;;  %v1689_v27 = vshll.u32 %v1670_v15, 16  ;;  %v338_v35 = vrot.slane %v1650_v4, 5 }
  0x2f   : > { %401 = vrot.lane.b32.xlu1 %v378_v40, %s1448_s4  ;;  %v277_v28 = vrot.slane %v1675_v21, 6  ;;  %v280_v29 = vrot.slane %v1678_v22, 7  ;;  %v337_v36 = vrot.slane %v1600_v44, 5  ;;  %v340_v37 = vrot.slane %v1659_v17, 5 }
  0x30   : > { %v265_v30 = vor.u32 %v264_v25, %v261_v24  ;;  %v269_v31 = vrot.slane %v1686_v26, 6  ;;  %v272_v32 = vrot.slane %v1689_v27, 7  ;;  %v382_v38 = vrot.slane %v1663_v19, 3 }
  0x31   : > { %399 = vrot.lane.b32.xlu0 %v375_v41, %s1448_s4  ;;  %v281_v33 = vor.u32 %v280_v29, %v277_v28  ;;  %v383_v39 = vrot.slane %v1666_v14, 4  ;;  %v339_v40 = vrot.slane %v1670_v15, 5  ;;  %v379_v41 = vrot.slane %v1641_v1, 3 }
  0x32   : > { %v273_v34 = vor.u32 %v272_v32, %v269_v31  ;;  %v389_v46 = vrot.slane %v1678_v22, 4  ;;  %v386_v51 = vrot.slane %v1689_v27, 4  ;;  %v452_v57 = vcombine.low %v1650_v4, %v1650_v4 }
  0x33   : > { %462 = vrot.lane.b32.xlu1 %v441_v42, %s1447_s30  ;;  %v380_v42 = vrot.slane %v1611_v48, 4  ;;  %v384_v43 = vor.u32 %v383_v39, %v382_v38  ;;  %v1730_v58 = vcombine.high %v1659_v17, %v1659_v17  ;;  %v1454_v63 = vmov 0  }
  0x34   : > { %968 = vmatprep.mubr.bf16.mxu0 %v1454_v63  ;;  %1009 = vmatprep.mubr.bf16.mxu1 %v1454_v63  ;;  %v495_v2 = vrot.slane %v1678_v22, 1  ;;  %v574_v9 = vrot.slane %v1650_v4, 7  ;;  %v575_v24 = vrot.slane %v1670_v15, 7  ;;  %v619_v25 = vrot.slane %v1641_v1, 5 }
  0x35   : > { %466 = vrot.lane.b32.xlu0 %v1605_v45, %s1447_s30  ;;  %v1741_v61 = vshll.u32 %v1730_v58, 16  ;;  %v620_v28 = vrot.slane %v1611_v48, 6  ;;  %v629_v31 = vrot.slane %v1678_v22, 6  ;;  %v626_v32 = vrot.slane %v1689_v27, 6 }
  0x36   : > { %1375 = vset.pattern.permute.xlu0 %v1454_v63  ;;  %v504_v10 = vor.u32 %v495_v2, %v1675_v21  ;;  %v1787_v22 = vshrl.u32 %v1730_v58, 16 }
  0x37   : > { %527 = vrot.lane.b32.xlu1 %v499_v47, %s1450_s6  ;;  %v443_v47 = vcombine.low %v1631_v59, %v1631_v59  ;;  %v494_v59 = vrot.slane %v1689_v27, 1 }
  0x39   : > { %1356 = vrot.lane.b32.xlu0 %v1355_v49, %s1450_s6  ;;  %v381_v49 = vor.u32 %v380_v42, %v379_v41  ;;  %v503_v12 = vor.u32 %v494_v59, %v1686_v26 }
  0x3b   : > { %582 = vrot.lane.b32.xlu1 %v571_v50, %s1451_s7  ;;  %v385_v50 = vrot.slane %v1686_v26, 3 }
  0x3d   : > { %529 = vrot.lane.b32.xlu0 %v500_v53, %s1450_s6 }
  0x3f   : > { %1361 = vrot.lane.b32.xlu1 %v1360_v54, %s1450_s6  ;;  %v450_v54 = vrot.slane %v443_v47, %v1529_v5  ;;  %v493_v5 = vrot.slane %v1666_v14, 1 }
  0x41   : > { %584 = vrot.lane.b32.xlu0 %v572_v55, %s1451_s7  ;;  %v387_v55 = vor.u32 %v386_v51, %v385_v50  ;;  %v1365_v62 = vpack.i.bf16 %v494_v59, %v493_v5  ;;  %v391_v50 = vrot.slane %v1787_v22, 3  ;;  %v392_v51 = vrot.slane %v1741_v61, 4 }
  0x43   : > { %580 = vrot.lane.b32.xlu1 %v570_v56, %s1451_s7  ;;  %v451_v56 = vcombine.low %v450_v54, %v450_v54 }
  0x45   : > { %525 = vrot.lane.b32.xlu0 %v498_v60, %s1450_s6  ;;  %v501_v60 = vor.u32 %v492_v52, %v1641_v1  ;;  %v502_v52 = vor.u32 %v493_v5, %v1663_v19  ;;  %v1780_v1 = vshrl.u32 %v1545_v11, 16  ;;  %v461_v5 = vcombine.low %v1646_v3, %v1646_v3 }
  0x47   : > { %649 = vrot.lane.b32.xlu1 %v618_v0, %s1452_s8  ;;  %v573_v0 = vrot.slane %v1600_v44, 7  ;;  %v293_v27 = vrot.slane %v1780_v1, 6 }
  0x49   : > { %647 = vrot.lane.b32.xlu0 %v615_v6, %s1452_s8  ;;  %v496_v6 = vrot.slane %v1741_v61, 1 }
  0x4b   : > { %689 = vrot.lane.b32.xlu1 %v1541_v8, %s1453_s9  ;;  %v1370_v7 = vpack.i.bf16 %v496_v6, %v495_v2 }
  0x4d   : > { %645 = vrot.lane.b32.xlu0 %v612_v18, %s1452_s8  ;;  %v576_v18 = vrot.slane %v1659_v17, 7 }
  0x4f   : > { %304 = vrot.lane.b32.xlu1 %v257_v20, %s1449_s5  ;;  %v622_v20 = vrot.slane %v1663_v19, 5  ;;  %v621_v19 = vor.u32 %v620_v28, %v619_v25 }
  0x51   : > { %691 = vrot.lane.b32.xlu0 %v684_v23, %s1453_s9  ;;  %v623_v23 = vrot.slane %v1666_v14, 6  ;;  %v625_v14 = vrot.slane %v1686_v26, 5  ;;  %v685_v26 = vcombine.low %v1659_v17, %v1659_v17 }
  0x53   : > { %687 = vrot.lane.b32.xlu1 %v1605_v45, %s1453_s9  ;;  %v388_v45 = vrot.slane %v1675_v21, 3  ;;  %v624_v29 = vor.u32 %v623_v23, %v622_v20  ;;  %v627_v48 = vor.u32 %v626_v32, %v625_v14 }
  0x55   : > { %306 = vrot.lane.b32.xlu0 %v265_v30, %s1449_s5  ;;  %v390_v53 = vor.u32 %v389_v46, %v388_v45  ;;  %v628_v30 = vrot.slane %v1675_v21, 5  ;;  %v1783_v21 = vshll.u32 %v1545_v11, 16  ;;  %v394_v45 = vrot.slane %v1780_v1, 3 }
  0x57   : > { %310 = vrot.lane.b32.xlu1 %v281_v33, %s1449_s5  ;;  %v630_v33 = vor.u32 %v629_v31, %v628_v30  ;;  %v395_v46 = vrot.slane %v1783_v21, 4  ;;  %v497_v3 = vrot.slane %v1783_v21, 1  ;;  %v569_v30 = vcombine.high %v1545_v11, %v1545_v11 }
  0x59   : > { %308 = vrot.lane.b32.xlu0 %v273_v34, %s1449_s5  ;;  %v296_v34 = vrot.slane %v1783_v21, 7  ;;  %v506_v20 = vor.u32 %v497_v3, %v1780_v1 }
  0x5b   : > { %351 = vrot.lane.b32.xlu1 %v338_v35, %s1446_s29  ;;  %v297_v39 = vor.u32 %v296_v34, %v293_v27  ;;  %v634_v27 = vrot.slane %v1780_v1, 5  ;;  %v635_v34 = vrot.slane %v1783_v21, 6  ;;  %v579_v21 = vrot.slane %v569_v30, 7 }
  0x5d   : > { %349 = vrot.lane.b32.xlu0 %v337_v36, %s1446_s29  ;;  %v285_v36 = vrot.slane %v1787_v22, 6 }
  0x5f   : > { %355 = vrot.lane.b32.xlu1 %v340_v37, %s1446_s29  ;;  %v288_v37 = vrot.slane %v1741_v61, 7 }
  0x61   : > { %353 = vrot.lane.b32.xlu0 %v339_v40, %s1446_s29  ;;  %v289_v41 = vor.u32 %v288_v37, %v285_v36 }
  0x63   : > { %405 = vrot.lane.b32.xlu1 %v384_v43, %s1448_s4  ;;  %v342_v43 = vrot.slane %v1545_v11, 5 }
  0x65   : > { %403 = vrot.lane.b32.xlu0 %v381_v49, %s1448_s4  ;;  %v341_v49 = vrot.slane %v1730_v58, 5 }
  0x67   : > { %409 = vrot.lane.b32.xlu1 %v390_v53, %s1448_s4 }
  0x69   : > { %407 = vrot.lane.b32.xlu0 %v387_v55, %s1448_s4 }
  0x6b   : > { %470 = vrot.lane.b32.xlu1 %v451_v56, %s1447_s30  ;;  %v393_v56 = vor.u32 %v392_v51, %v391_v50 }
  0x6d   : > { %468 = vrot.lane.b32.xlu0 %v1541_v8, %s1447_s30 }
  0x6f   : > { %474 = vrot.lane.b32.xlu1 %v452_v57, %s1447_s30 }
  0x71   : > { %472 = vrot.lane.b32.xlu0 %v450_v54, %s1447_s30  ;;  %v396_v54 = vor.u32 %v395_v46, %v394_v45 }
  0x73   : > { %531 = vrot.lane.b32.xlu1 %v501_v60, %s1450_s6 }
  0x75   : > { %1366 = vrot.lane.b32.xlu0 %v1365_v62, %s1450_s6  ;;  %v505_v62 = vor.u32 %v496_v6, %v1787_v22  ;;  %v577_v6 = vrot.slane %v1730_v58, 7 }
  0x77   : > { %586 = vrot.lane.b32.xlu1 %v573_v0, %s1451_s7 }
  0x79   : > { %533 = vrot.lane.b32.xlu0 %v502_v52, %s1450_s6 }
  0x7b   : > { %1371 = vrot.lane.b32.xlu1 %v1370_v7, %s1450_s6  ;;  %v631_v7 = vrot.slane %v1787_v22, 5 }
  0x7d   : > { %588 = vrot.lane.b32.xlu0 %v574_v9, %s1451_s7  ;;  %v632_v9 = vrot.slane %v1741_v61, 6 }
  0x7f   : > { %537 = vrot.lane.b32.xlu1 %v504_v10, %s1450_s6 }
  0x81   : > { %535 = vrot.lane.b32.xlu0 %v503_v12, %s1450_s6 }
  0x83   : > { %592 = vrot.lane.b32.xlu1 %v576_v18, %s1451_s7 }
  0x85   : > { %590 = vrot.lane.b32.xlu0 %v575_v24, %s1451_s7 }
  0x87   : > { %653 = vrot.lane.b32.xlu1 %v624_v29, %s1452_s8  ;;  %v633_v29 = vor.u32 %v632_v9, %v631_v7  ;;  %v905_v7 = vld [vmem:[%s2261_s2] sm:$0xff] }
  0x89   : > { %651 = vrot.lane.b32.xlu0 %v621_v19, %s1452_s8 }
  0x8b   : > { %657 = vrot.lane.b32.xlu1 %v630_v33, %s1452_s8  ;;  %v578_v33 = vrot.slane %v1545_v11, 7 }
  0x8d   : > { %655 = vrot.lane.b32.xlu0 %v627_v48, %s1452_s8 }
  0x8f   : > { %695 = vrot.lane.b32.xlu1 %v452_v57, %s1453_s9 }
  0x91   : > { %v1794_v35 = vpop.permute.xlu1 %343  ;;  %693 = vrot.lane.b32.xlu0 %v1549_v13, %s1453_s9 }
  0x93   : > { %v1800_v38 = vpop.permute.xlu0 %347  ;;  %699 = vrot.lane.b32.xlu1 %v685_v26, %s1453_s9 }
  0x95   : > { %v1803_v40 = vpop.permute.xlu1 %464  ;;  %697 = vrot.lane.b32.xlu0 %v1650_v4, %s1453_s9 }
  0x97   : > { %v1807_v42 = vpop.permute.xlu0 %397  ;;  %314 = vrot.lane.b32.xlu1 %v297_v39, %s1449_s5 }
  0x99   : > { %v1813_v47 = vpop.permute.xlu1 %345  ;;  %312 = vrot.lane.b32.xlu0 %v289_v41, %s1449_s5  ;;  %s1458_s5 = smov [#allocation2]  }
  0x9a   : > { %v362_v39 = vsel %vm361_vm6, %v1794_v35, %v1813_v47  ;;  %v636_v35 = vor.u32 %v635_v34, %v634_v27 }
  0x9b   : > { %v301_v53 = vpop.permute.xlu0 %300  ;;  %359 = vrot.lane.b32.xlu1 %v342_v43, %s1446_s29  ;;  %v638_v43 = vshrl.u32 %v569_v30, 16 }
  0x9d   : > { %v299_v55 = vpop.permute.xlu1 %298  ;;  %357 = vrot.lane.b32.xlu0 %v341_v49, %s1446_s29 }
  0x9e   : > { %v317_v61 = vsel %vm316_vm0, %v299_v55, %v301_v53 }
  0x9f   : > { %v1821_v57 = vpop.permute.xlu0 %302  ;;  %413 = vrot.lane.b32.xlu1 %v396_v54, %s1448_s4  ;;  %v720_v48 = vsel %vm1845_vm7, %v1541_v8, %v317_v61 }
  0xa0   : > { %v318_v2 = vsel %vm316_vm0, %v301_v53, %v1821_v57  ;;  %v686_v53 = vcombine.low %v1545_v11, %v1545_v11 }
  0xa1   : > { %v1826_v59 = vpop.permute.xlu1 %401  ;;  %411 = vrot.lane.b32.xlu0 %v393_v56, %s1448_s4  ;;  %v721_v12 = vsel %vm1845_vm7, %v1559_v16, %v318_v2  ;;  %v363_v16 = vsel %vm361_vm6, %v1813_v47, %v1800_v38  ;;  %v641_v47 = vshll.u32 %v569_v30, 16  ;;  %s1381_s4 = scalar_lea.vmem %s2216_s27, 576 }
  0xa2   : > { %v736_v31 = vsel %vm729_vm8, %v721_v12, %v363_v16  ;;  %p1382_p11 = scmp.ne.s32.totalorder %s2216_s27, %s1381_s4 }
  0xa3   : > { %v400_v60 = vpop.permute.xlu0 %399  ;;  %478 = vrot.lane.b32.xlu1 %v461_v5, %s1447_s30  ;;  %v640_v5 = vrot.slane %v638_v43, 5 }
  0xa4   : > { %v417_v24 = vsel %vm2264_vm3, %v400_v60, %v1826_v59  ;;  %v416_v36 = vsel %vm2264_vm3, %v1807_v42, %v400_v60  ;;  %v732_v42 = vsel %vm729_vm8, %v720_v48, %v362_v39  ;;  %v643_v60 = vrot.slane %v641_v47, 6  ;;  %p1383_p12 = pnand %p1382_p11, %p1517_p5 }
  0xa5   : > { %v463_v0 = vpop.permute.xlu1 %462  ;;  %476 = vrot.lane.b32.xlu0 %v1650_v4, %s1447_s30  ;;  %v770_v22 = vsel %vm1859_vm12, %v736_v31, %v417_v24  ;;  %v769_v45 = vsel %vm1859_vm12, %v732_v42, %v416_v36  ;;  %vm2266_vm3 = vcmask 1043456   ;;  %s2214_s30 = scalar_lea.hbm %s2262_s3, %s1302_s26 }
  0xa6   : > { %v481_v46 = vsel %vm2263_vm9, %v463_v0, %v1803_v40  ;;  %p1384_p13 = pneg %p1383_p12 }
  0xa7   : > { %v1838_v52 = vpop.permute.xlu0 %466  ;;  %539 = vrot.lane.b32.xlu1 %v505_v62, %s1450_s6  ;;  %v781_v55 = vsel %vm778_vm14, %v769_v45, %v481_v46  ;;  %v1982_v45 = vld [vmem:[%s2260_s1] sm:$0xf] }
  0xa8   : > { %v482_v25 = vsel %vm2263_vm9, %v1803_v40, %v1838_v52  ;;  %vm707_vm9 = vcmask 474112  }
  0xa9   : > { %v1852_v18 = vpop.permute.xlu1 %527  ;;  %523 = vrot.lane.b32.xlu0 %v497_v3, %s1450_s6  ;;  %v785_v8 = vsel %vm778_vm14, %v770_v22, %v482_v25  ;;  %v644_v3 = vor.u32 %v643_v60, %v640_v5 }
  0xab   : > { %v1871_v28 = vpop.permute.xlu0 %1356  ;;  %594 = vrot.lane.b32.xlu1 %v577_v6, %s1451_s7 }
  0xac   : > { %v1359_v19 = vunpack.i.h.bf16 %v1871_v28  ;;  %v1358_v14 = vunpack.i.l.bf16 %v1871_v28 }
  0xad   : > { %v1891_v26 = vpop.permute.xlu1 %582  ;;  %541 = vrot.lane.b32.xlu0 %v506_v20, %s1450_s6  ;;  %v1455_v20 = vmov 65535   ;;  %s1385_s6 = sshll.u32 %s1458_s5, 4  ;;  %s1386_s6 = int_to_ptr.vmem [resolvable:$false] %s1385_s6 }
  0xae   : > { %v545_v37 = vsel %vm543_vm13, %v1358_v14, %v1359_v19  ;;  %v916_v61 = vsel %vm766_vm4, 4294967295, %v1455_v20  ;;  %vm2265_vm4 = vcmask 220160   ;;  %p1388_p0 = scmp.lt.s32.totalorder %s2216_s27, %s1386_s6 }
  0xaf   : > { %v1905_v41 = vpop.permute.xlu0 %529  ;;  %659 = vrot.lane.b32.xlu1 %v633_v29, %s1452_s8  ;;  %v819_v1 = vsel %vm1881_vm15, %v785_v8, %v545_v37  ;;  %v1961_v48 = vsel %vm778_vm14, %v916_v61, 0 }
  0xb0   : > { %936 = vmatprep.subr.bf16.mxu0 %v819_v1  ;;  %v553_v29 = vsel %vm543_vm13, %v1852_v18, %v1905_v41 }
  0xb1   : > { %v1915_v49 = vpop.permute.xlu1 %1361  ;;  %596 = vrot.lane.b32.xlu0 %v578_v33, %s1451_s7 }
  0xb2   : > { %v1363_v50 = vunpack.i.l.bf16 %v1915_v49 }
  0xb3   : > { %v1919_v51 = vpop.permute.xlu0 %584  ;;  %598 = vrot.lane.b32.xlu1 %v579_v21, %s1451_s7  ;;  %s1387_s7 = scalar_lea.vmem %s1386_s6, 1152 }
  0xb4   : > { %v544_v54 = vsel %vm543_vm13, %v1363_v50, %v1358_v14  ;;  %v602_v12 = vsel %vm600_vm1, %v1891_v26, %v1919_v51  ;;  %p1389_p1 = scmp.lt.s32.totalorder %s1387_s7, %s1381_s4 }
  0xb5   : > { %v581_v40 = vpop.permute.xlu1 %580  ;;  %661 = vrot.lane.b32.xlu0 %v636_v35, %s1452_s8  ;;  %v818_v56 = vsel %vm1881_vm15, %v781_v55, %v544_v54  ;;  %v834_v31 = vsel %vm827_vm10, %v553_v29, %v602_v12 }
  0xb6   : > { %937 = vmatpush1.bf16.msra.mxu0 %v818_v56  ;;  %v601_v22 = vsel %vm600_vm1, %v581_v40, %v1891_v26  ;;  %p1390_p2 = por %p1389_p1, %p1388_p0 }
  0xb7   : > { %v526_v62 = vpop.permute.xlu0 %525  ;;  %703 = vrot.lane.b32.xlu1 %v686_v53, %s1453_s9 }
  0xb8   : > { %v552_v30 = vsel %vm543_vm13, %v526_v62, %v1852_v18  ;;  %p1391_p3 = pnand %p1390_p2, %p1384_p13 }
  0xb9   : > { %v1930_v0 = vpop.permute.xlu1 %649  ;;  %701 = vrot.lane.b32.xlu0 %v1659_v17, %s1453_s9  ;;  %v830_v18 = vsel %vm827_vm10, %v552_v30, %v601_v22 }
  0xbb   : > { %v648_v2 = vpop.permute.xlu0 %647  ;;  %705 = vrot.lane.b32.xlu1 %v1545_v11, %s1453_s9 }
  0xbc   : > { %v667_v16 = vsel %vm665_vm2, %v648_v2, %v1930_v0 }
  0xbd   : > { %v690_v6 = vpop.permute.xlu1 %689  ;;  %663 = vrot.lane.b32.xlu0 %v644_v3, %s1452_s8  ;;  %v868_v27 = vsel %vm1945_vm11, %v834_v31, %v667_v16 }
  0xbf   : > { %v646_v9 = vpop.permute.xlu0 %645 }
  0xc0   : > { %v666_v14 = vsel %vm665_vm2, %v646_v9, %v648_v2 }
  0xc1   : > { %v305_v25 = vpop.permute.xlu1 %304  ;;  %908 = vperm.xlu0 %1375, %v905_v7   ;;  %v867_v8 = vsel %vm1945_vm11, %v830_v18, %v666_v14 }
  0xc2   : > { %v319_v35 = vsel %vm316_vm0, %v1821_v57, %v305_v25 }
  0xc3   : > { %v1958_v33 = vpop.permute.xlu0 %691  ;;  %v722_v53 = vsel %vm1845_vm7, %v1549_v13, %v319_v35 }
  0xc4   : > { %v709_v34 = vsel %vm707_vm9, %v690_v6, %v1958_v33 }
  0xc5   : > { %v882_v36 = vsel %vm2266_vm3, %v868_v27, %v709_v34  ;;  %v688_v37 = vpop.permute.xlu1 %687 }
  0xc6   : > { %v708_v39 = vsel %vm707_vm9, %v688_v37, %v690_v6  ;;  %v920_v1 = vand.u32 %v1961_v48, %v882_v36 }
  0xc7   : > { %v879_v26 = vsel %vm2266_vm3, %v867_v8, %v708_v39  ;;  %v307_v21 = vpop.permute.xlu0 %306 }
  0xc8   : > { %938 = vmatprep.subr.bf16.mxu0 %v920_v1  ;;  %v918_v42 = vand.u32 %v1961_v48, %v879_v26  ;;  %v320_v20 = vsel %vm316_vm0, %v305_v25, %v307_v21 }
  0xc9   : > { %v1977_v43 = vpop.permute.xlu1 %310  ;;  %v723_v30 = vsel %vm1845_vm7, %v1600_v44, %v320_v20 }
  0xca   : > { %939 = vmatpush1.bf16.msra.mxu0 %v918_v42 }
  0xcb   : > { %v309_v46 = vpop.permute.xlu0 %308 }
  0xcc   : > { %v321_v27 = vsel %vm316_vm0, %v307_v21, %v309_v46 }
  0xcd   : > { %v352_v47 = vpop.permute.xlu1 %351  ;;  %1271 = vmatmul.mubr.msk.bf16.vlgmr.msra.gmra.mrb[0].mxu0 %vm2265_vm4, %v1982_v45  ;;  %vm2278_vm4 = vcmask 760832  }
  0xce   : > { %1050 = vmatprep.mubr.bf16.mxu0 %v1454_v63  ;;  %vm2279_vm3 = vmmov %vm2278_vm4 }
  0xcf   : > { %v350_v50 = vpop.permute.xlu0 %349 }
  0xd0   : > { %v364_v54 = vsel %vm361_vm6, %v1800_v38, %v350_v50  ;;  %v365_v61 = vsel %vm361_vm6, %v350_v50, %v352_v47 }
  0xd1   : > { %v740_v55 = vsel %vm729_vm8, %v722_v53, %v364_v54  ;;  %v1995_v40 = vpop.permute.xlu1 %355  ;;  %v744_v14 = vsel %vm729_vm8, %v723_v30, %v365_v61 }
  0xd3   : > { %v354_v56 = vpop.permute.xlu0 %353 }
  0xd4   : > { %v367_v39 = vsel %vm361_vm6, %v354_v56, %v1995_v40 }
  0xd5   : > { %v406_v57 = vpop.permute.xlu1 %405 }
  0xd7   : > { %v404_v5 = vpop.permute.xlu0 %403 }
  0xd8   : > { %v418_v60 = vsel %vm2277_vm5, %v1826_v59, %v404_v5  ;;  %v1364_v59 = vunpack.i.h.bf16 %v1915_v49  ;;  %v419_v29 = vsel %vm2277_vm5, %v404_v5, %v406_v57  ;;  %v322_v49 = vsel %vm316_vm0, %v309_v46, %v1977_v43 }
  0xd9   : > { %v771_v62 = vsel %vm1859_vm12, %v740_v55, %v418_v60  ;;  %v2001_v3 = vpop.permute.xlu1 %409  ;;  %v772_v25 = vsel %vm1859_vm12, %v744_v14, %v419_v29  ;;  %v725_v42 = vsel %vm1845_vm7, %v1670_v15, %v322_v49 }
  0xda   : > { %v546_v18 = vsel %vm543_vm13, %v1359_v19, %v1364_v59  ;;  %v366_v19 = vsel %vm361_vm6, %v352_v47, %v354_v56  ;;  %v724_v47 = vsel %vm1845_vm7, %v1650_v4, %v321_v27  ;;  %v752_v53 = vsel %vm729_vm8, %v725_v42, %v367_v39 }
  0xdb   : > { %v408_v2 = vpop.permute.xlu0 %407  ;;  %v748_v15 = vsel %vm729_vm8, %v724_v47, %v366_v19 }
  0xdd   : > { %v471_v13 = vpop.permute.xlu1 %470 }
  0xdf   : > { %v469_v6 = vpop.permute.xlu0 %468 }
  0xe0   : > { %v483_v38 = vsel %vm2278_vm4, %v1838_v52, %v469_v6  ;;  %v484_v52 = vsel %vm2279_vm3, %v469_v6, %v471_v13  ;;  %vm2280_vm3 = vmmov %vm2277_vm5  ;;  %vm2282_vm5 = vcmask 760832  }
  0xe1   : > { %v2005_v7 = vpop.permute.xlu1 %474  ;;  %v789_v9 = vsel %vm778_vm14, %v771_v62, %v483_v38  ;;  %v793_v8 = vsel %vm778_vm14, %v772_v25, %v484_v52  ;;  %vm2281_vm4 = vmmov %vm2280_vm3 }
  0xe2   : > { %v420_v46 = vsel %vm2281_vm4, %v406_v57, %v408_v2  ;;  %vm2284_vm4 = vcmask 1043456  }
  0xe3   : > { %v473_v12 = vpop.permute.xlu0 %472  ;;  %v773_v60 = vsel %vm1859_vm12, %v748_v15, %v420_v46 }
  0xe4   : > { %v486_v35 = vsel %vm2282_vm5, %v473_v12, %v2005_v7 }
  0xe5   : > { %v532_v16 = vpop.permute.xlu1 %531 }
  0xe6   : > { %v554_v44 = vsel %vm543_vm13, %v1905_v41, %v532_v16  ;;  %v421_v41 = vsel %vm2280_vm3, %v408_v2, %v2001_v3  ;;  %vm2283_vm3 = vmmov %vm2282_vm5 }
  0xe7   : > { %v1367_v31 = vpop.permute.xlu0 %1366  ;;  %v485_v54 = vsel %vm2283_vm3, %v471_v13, %v473_v12  ;;  %v774_v56 = vsel %vm1859_vm12, %v752_v53, %v421_v41  ;;  %vm2285_vm5 = vmmov %vm2284_vm4 }
  0xe8   : > { %v1368_v22 = vunpack.i.l.bf16 %v1367_v31  ;;  %v1369_v1 = vunpack.i.h.bf16 %v1367_v31  ;;  %v801_v62 = vsel %vm778_vm14, %v774_v56, %v486_v35  ;;  %v797_v2 = vsel %vm778_vm14, %v773_v60, %v485_v54  ;;  %vm2286_vm3 = vmmov %vm2284_vm4 }
  0xe9   : > { %v587_v34 = vpop.permute.xlu1 %586 }
  0xea   : > { %v603_v36 = vsel %vm600_vm1, %v1919_v51, %v587_v34  ;;  %v547_v37 = vsel %vm543_vm13, %v1364_v59, %v1368_v22  ;;  %v820_v51 = vsel %vm1881_vm15, %v789_v9, %v546_v18  ;;  %v548_v5 = vsel %vm543_vm13, %v1368_v22, %v1369_v1 }
  0xeb   : > { %v838_v26 = vsel %vm827_vm10, %v554_v44, %v603_v36  ;;  %v534_v21 = vpop.permute.xlu0 %533  ;;  %v821_v28 = vsel %vm1881_vm15, %v793_v8, %v547_v37  ;;  %v822_v38 = vsel %vm1881_vm15, %v797_v2, %v548_v5  ;;  %v1456_v2 = vmov 0.0  }
  0xec   : > { %977 = vmatprep.subr.bf16.mxu1 %v821_v28  ;;  %v555_v49 = vsel %vm543_vm13, %v532_v16, %v534_v21 }
  0xed   : > { %978 = vmatpush1.bf16.msra.mxu1 %v820_v51  ;;  %v2047_v50 = vpop.permute.xlu1 %1371 }
  0xee   : > { %v1373_v55 = vunpack.i.l.bf16 %v2047_v50 }
  0xef   : > { %v589_v57 = vpop.permute.xlu0 %588 }
  0xf0   : > { %v549_v4 = vsel %vm543_vm13, %v1369_v1, %v1373_v55  ;;  %v604_v14 = vsel %vm600_vm1, %v587_v34, %v589_v57 }
  0xf1   : > { %v2066_v13 = vpop.permute.xlu1 %537  ;;  %v823_v6 = vsel %vm1881_vm15, %v801_v62, %v549_v4  ;;  %v842_v25 = vsel %vm827_vm10, %v555_v49, %v604_v14 }
  0xf2   : > { %1018 = vmatprep.subr.bf16.mxu0 %v823_v6 }
  0xf3   : > { %v536_v9 = vpop.permute.xlu0 %535  ;;  %1019 = vmatpush1.bf16.msra.mxu0 %v822_v38 }
  0xf4   : > { %v556_v28 = vsel %vm543_vm13, %v534_v21, %v536_v9  ;;  %v557_v19 = vsel %vm543_vm13, %v536_v9, %v2066_v13 }
  0xf5   : > { %v2072_v12 = vpop.permute.xlu1 %592 }
  0xf7   : > { %v591_v20 = vpop.permute.xlu0 %590 }
  0xf8   : > { %v605_v18 = vsel %vm600_vm1, %v589_v57, %v591_v20 }
  0xf9   : > { %v654_v59 = vpop.permute.xlu1 %653  ;;  %v846_v51 = vsel %vm827_vm10, %v556_v28, %v605_v18 }
  0xfb   : > { %v652_v61 = vpop.permute.xlu0 %651 }
  0xfc   : > { %v668_v29 = vsel %vm665_vm2, %v1930_v0, %v652_v61  ;;  %v669_v22 = vsel %vm665_vm2, %v652_v61, %v654_v59  ;;  %v606_v0 = vsel %vm600_vm1, %v591_v20, %v2072_v12 }
  0xfd   : > { %v869_v30 = vsel %vm1945_vm11, %v838_v26, %v668_v29  ;;  %v2078_v52 = vpop.permute.xlu1 %657  ;;  %v870_v36 = vsel %vm1945_vm11, %v842_v25, %v669_v22  ;;  %v850_v42 = vsel %vm827_vm10, %v557_v19, %v606_v0 }
  0xff   : > { %v656_v31 = vpop.permute.xlu0 %655 }
 0x100   : > { %v670_v8 = vsel %vm665_vm2, %v654_v59, %v656_v31  ;;  %v671_v16 = vsel %vm665_vm2, %v656_v31, %v2078_v52 }
 0x101   : > { %v696_v27 = vpop.permute.xlu1 %695  ;;  %v871_v35 = vsel %vm1945_vm11, %v846_v51, %v670_v8  ;;  %v872_v47 = vsel %vm1945_vm11, %v850_v42, %v671_v16 }
 0x103   : > { %v694_v44 = vpop.permute.xlu0 %693 }
 0x104   : > { %v710_v37 = vsel %vm707_vm9, %v1958_v33, %v694_v44  ;;  %v711_v34 = vsel %vm707_vm9, %v694_v44, %v696_v27 }
 0x105   : > { %v885_v39 = vsel %vm2284_vm4, %v869_v30, %v710_v37  ;;  %v888_v1 = vsel %vm2285_vm5, %v870_v36, %v711_v34  ;;  %v2097_v26 = vpop.permute.xlu1 %699  ;;  %vm2287_vm4 = vmmov %vm2286_vm3  ;;  %vm2288_vm5 = vcmask 220160  }
 0x106   : > { %v924_v33 = vand.u32 %v1961_v48, %v888_v1  ;;  %v922_v41 = vand.u32 %v1961_v48, %v885_v39 }
 0x107   : > { %v698_v46 = vpop.permute.xlu0 %697 }
 0x108   : > { %v712_v21 = vsel %vm707_vm9, %v696_v27, %v698_v46  ;;  %v713_v53 = vsel %vm707_vm9, %v698_v46, %v2097_v26  ;;  %979 = vmatprep.subr.bf16.mxu1 %v924_v33 }
 0x109   : > { %v891_v54 = vsel %vm2286_vm3, %v871_v35, %v712_v21  ;;  %v894_v15 = vsel %vm2287_vm4, %v872_v47, %v713_v53  ;;  %980 = vmatpush1.bf16.msra.mxu1 %v922_v41  ;;  %v315_v56 = vpop.permute.xlu1 %314  ;;  %vm2289_vm3 = vmmov %vm2288_vm5  ;;  %vm1457_vm4 = vmmov 0  }
 0x10a   : > { %v926_v57 = vand.u32 %v1961_v48, %v891_v54  ;;  %v928_v5 = vand.u32 %v1961_v48, %v894_v15 }
 0x10b   : > { %v313_v60 = vpop.permute.xlu0 %312 }
 0x10c   : > { %1020 = vmatprep.subr.bf16.mxu0 %v928_v5  ;;  %1272 = vmatmul.mubr.msk.bf16.vlgmr.msra.gmra.mrb[0].mxu1 %vm2288_vm5, %v1982_v45  ;;  %v323_v4 = vsel %vm316_vm0, %v1977_v43, %v313_v60  ;;  %vm2290_vm5 = vcmask 769024  }
 0x10d   : > { %v360_v62 = vpop.permute.xlu1 %359  ;;  %1021 = vmatpush1.bf16.msra.mxu0 %v926_v57  ;;  %1091 = vmatprep.mubr.bf16.mxu1 %v1454_v63  ;;  %v726_v38 = vsel %vm1845_vm7, %v1659_v17, %v323_v4  ;;  %v728_v17 = vsel %vm1845_vm7, %v1545_v11, %v315_v56 }
 0x10e   : > { %1292 = vmatprep.subr.bf16.mxu0 %v1456_v2  ;;  %v764_v49 = vsel %vm729_vm8, %v728_v17, %v360_v62 }
 0x10f   : > { %v358_v6 = vpop.permute.xlu0 %357 }
 0x110   : > { %v368_v9 = vsel %vm361_vm6, %v1995_v40, %v358_v6  ;;  %1273 = vmatmul.mubr.msk.bf16.vlgmr.msra.gmra.mrb[4].mxu0 %vm2289_vm3, %v1982_v45  ;;  %v324_v40 = vsel %vm316_vm0, %v313_v60, %v315_v56  ;;  %v369_v30 = vsel %vm361_vm6, %v358_v6, %v360_v62  ;;  %vm2291_vm3 = vmmov %vm2290_vm5  ;;  %vm2294_vm0 = vcmask 1043456  }
 0x111   : > { %v756_v20 = vsel %vm729_vm8, %v726_v38, %v368_v9  ;;  %v414_v43 = vpop.permute.xlu1 %413  ;;  %1296 = vmatprep.mubr.msk.bf16.mxu0 %vm1457_vm4, %v1456_v2  ;;  %vm2292_vm4 = vcmask 760832   ;;  %v727_v27 = vsel %vm1845_vm7, %v1730_v58, %v324_v40  ;;  %vm2295_vm6 = vmmov %vm2294_vm0 }
 0x112   : > { %v760_v18 = vsel %vm729_vm8, %v727_v27, %v369_v30  ;;  %v777_v44 = vsel %vm1859_vm12, %v764_v49, %v414_v43  ;;  %vm2296_vm7 = vmmov %vm2294_vm0  ;;  %vm2297_vm8 = vcmask 220160  }
 0x113   : > { %v412_v59 = vpop.permute.xlu0 %411 }
 0x114   : > { %v422_v63 = vsel %vm2290_vm5, %v2001_v3, %v412_v59  ;;  %v423_v14 = vsel %vm2291_vm3, %v412_v59, %v414_v43  ;;  %v1374_v3 = vunpack.i.h.bf16 %v2047_v50  ;;  %vm2293_vm5 = vmmov %vm2292_vm4 }
 0x115   : > { %v775_v61 = vsel %vm1859_vm12, %v756_v20, %v422_v63  ;;  %v479_v29 = vpop.permute.xlu1 %478  ;;  %v776_v0 = vsel %vm1859_vm12, %v760_v18, %v423_v14  ;;  %vm2298_vm12 = vmmov %vm2297_vm8 }
 0x116   : > { %v550_v23 = vsel %vm543_vm13, %v1373_v55, %v1374_v3 }
 0x117   : > { %v477_v31 = vpop.permute.xlu0 %476 }
 0x118   : > { %v487_v22 = vsel %vm2292_vm4, %v2005_v7, %v477_v31  ;;  %v488_v11 = vsel %vm2293_vm5, %v477_v31, %v479_v29  ;;  %v813_v7 = vsel %vm778_vm14, %v777_v44, %v479_v29 }
 0x119   : > { %v540_v25 = vpop.permute.xlu1 %539  ;;  %v805_v36 = vsel %vm778_vm14, %v775_v61, %v487_v22  ;;  %v809_v34 = vsel %vm778_vm14, %v776_v0, %v488_v11 }
 0x11a   : > { %v824_v39 = vsel %vm1881_vm15, %v805_v36, %v550_v23  ;;  %v558_v32 = vsel %vm543_vm13, %v2066_v13, %v540_v25 }
 0x11b   : > { %v524_v37 = vpop.permute.xlu0 %523 }
 0x11c   : > { %v551_v58 = vsel %vm543_vm13, %v1374_v3, %v524_v37  ;;  %v826_v10 = vsel %vm1881_vm15, %v813_v7, %v524_v37 }
 0x11d   : > { %v595_v8 = vpop.permute.xlu1 %594  ;;  %1293 = vmatpush3.bf16.msra.mxu0 %v826_v10  ;;  %v825_v16 = vsel %vm1881_vm15, %v809_v34, %v551_v58 }
 0x11e   : > { %1059 = vmatprep.subr.bf16.mxu1 %v825_v16  ;;  %1294 = vmatprep.subr.bf16.mxu0 %v1456_v2  ;;  %v607_v51 = vsel %vm600_vm1, %v2072_v12, %v595_v8 }
 0x11f   : > { %v542_v1 = vpop.permute.xlu0 %541  ;;  %1060 = vmatpush1.bf16.msra.mxu1 %v824_v39  ;;  %v854_v47 = vsel %vm827_vm10, %v558_v32, %v607_v51 }
 0x120   : > { %v559_v35 = vsel %vm543_vm13, %v540_v25, %v542_v1 }
 0x121   : > { %v660_v28 = vpop.permute.xlu1 %659 }
 0x122   : > { %v672_v50 = vsel %vm665_vm2, %v2078_v52, %v660_v28 }
 0x123   : > { %v597_v19 = vpop.permute.xlu0 %596  ;;  %v873_v12 = vsel %vm1945_vm11, %v854_v47, %v672_v50 }
 0x124   : > { %v608_v42 = vsel %vm600_vm1, %v595_v8, %v597_v19 }
 0x125   : > { %v599_v33 = vpop.permute.xlu1 %598  ;;  %v858_v21 = vsel %vm827_vm10, %v559_v35, %v608_v42 }
 0x126   : > { %v609_v13 = vsel %vm600_vm1, %v597_v19, %v599_v33 }
 0x127   : > { %v662_v41 = vpop.permute.xlu0 %661  ;;  %v862_v2 = vsel %vm827_vm10, %v542_v1, %v609_v13 }
 0x128   : > { %v673_v55 = vsel %vm665_vm2, %v660_v28, %v662_v41 }
 0x129   : > { %v704_v46 = vpop.permute.xlu1 %703  ;;  %v874_v54 = vsel %vm1945_vm11, %v858_v21, %v673_v55 }
 0x12b   : > { %v702_v53 = vpop.permute.xlu0 %701 }
 0x12c   : > { %v714_v52 = vsel %vm707_vm9, %v2097_v26, %v702_v53  ;;  %v715_v15 = vsel %vm707_vm9, %v702_v53, %v704_v46 }
 0x12d   : > { %v897_v56 = vsel %vm2294_vm0, %v873_v12, %v714_v52  ;;  %v900_v57 = vsel %vm2295_vm6, %v874_v54, %v715_v15  ;;  %v706_v60 = vpop.permute.xlu1 %705 }
 0x12e   : > { %v930_v5 = vand.u32 %v1961_v48, %v897_v56  ;;  %v932_v4 = vand.u32 %v1961_v48, %v900_v57  ;;  %v716_v6 = vsel %vm707_vm9, %v704_v46, %v706_v60  ;;  %vm1190_vm9 = vcmask 519168  }
 0x12f   : > { %v664_v62 = vpop.permute.xlu0 %663 }
 0x130   : > { %v674_v26 = vsel %vm665_vm2, %v662_v41, %v664_v62  ;;  %1061 = vmatprep.subr.bf16.mxu1 %v932_v4 }
 0x131   : > { %v875_v38 = vsel %vm1945_vm11, %v862_v2, %v674_v26  ;;  %1062 = vmatpush1.bf16.msra.mxu1 %v930_v5 }
 0x132   : > { %v903_v9 = vsel %vm2296_vm7, %v875_v38, %v716_v6 }
 0x133   : > { %v934_v20 = vand.u32 %v1961_v48, %v903_v9 }
 0x134   : > { %1274 = vmatmul.mubr.msk.bf16.vlgmr.msra.gmra.mrb[4].mxu1 %vm2297_vm8, %v1982_v45 }
 0x135   : > { %1295 = vmatpush3.bf16.msra.mxu0 %v934_v20 }
 0x138   : > { %1297 = vmatmul.mubr.msk.bf16.vlgmr.msra.gmra.mrb[8].mxu0 %vm2298_vm12, %v1982_v45 }
 0x140   : > { %v909_v43 = vpop.permute.xlu0 %908 }
 0x1a0   : > { %v970_v59 = vpop.f32.mrb[0].mxu0 }
 0x1a1   : > { %v972_v63 = vpop.f32.mrb[1].mxu0  ;;  %v971_v61 = vadd.f32 %v970_v59, %v909_v43 }
 0x1a2   : > { %v974_v24 = vpop.f32.mrb[2].mxu0  ;;  %v973_v29 = vadd.f32 %v972_v63, %v909_v43 }
 0x1a3   : > { %v975_v17 = vpop.f32.mrb[3].mxu0  ;;  %v1140_v40 = vmax.f32 %v971_v61, 0.0 }
 0x1a4   : > { %v1141_v30 = vmax.f32 %v973_v29, 0.0 }
 0x1a6   : > { %v1284_v48 = vpack.c.bf16 %v1141_v30, %v1140_v40 }
 0x1a8   : > { %1186 = vst [vmem:[%s2203_s25] sm:$0xff] %v1284_v48 }
 0x1df   : > { %v1011_v31 = vpop.f32.mrb[0].mxu1 }
 0x1e0   : > { %v1012_v45 = vadd.f32 %v1011_v31, %v909_v43  ;;  %v1013_v14 = vpop.f32.mrb[1].mxu1 }
 0x1e1   : > { %v1014_v22 = vadd.f32 %v1013_v14, %v909_v43  ;;  %v1015_v3 = vpop.f32.mrb[2].mxu1 }
 0x1e2   : > { %v1142_v27 = vmax.f32 %v1012_v45, 0.0  ;;  %v1016_v49 = vpop.f32.mrb[3].mxu1 }
 0x1e3   : > { %v1143_v11 = vmax.f32 %v1014_v22, 0.0  ;;  %v1052_v25 = vpop.f32.mrb[4].mxu0 }
 0x1e4   : > { %v1053_v18 = vadd.f32 %v1052_v25, %v909_v43  ;;  %v1054_v44 = vpop.f32.mrb[5].mxu0 }
 0x1e5   : > { %v1285_v0 = vpack.c.bf16 %v1143_v11, %v1142_v27  ;;  %v1055_v7 = vadd.f32 %v1054_v44, %v909_v43  ;;  %v1056_v36 = vpop.f32.mrb[6].mxu0 }
 0x1e6   : > { %v1144_v37 = vmax.f32 %v1053_v18, 0.0  ;;  %v1057_v58 = vpop.f32.mrb[7].mxu0 }
 0x1e7   : > { %1187 = vst [vmem:[%s2203_s25 + $0x8] sm:$0xff] %v1285_v0  ;;  %v1145_v10 = vmax.f32 %v1055_v7, 0.0 }
 0x1e9   : > { %v1286_v34 = vpack.c.bf16 %v1145_v10, %v1144_v37 }
 0x1eb   : > { %1188 = vst [vmem:[%s2203_s25 + $0x10] sm:$0xff] %v1286_v34 }
 0x207   : > { %v1093_v8 = vpop.f32.mrb[4].mxu1 }
 0x208   : > { %v1094_v16 = vadd.f32 %v1093_v8, %v909_v43  ;;  %v1095_v23 = vpop.f32.mrb[5].mxu1 }
 0x209   : > { %v1096_v39 = vadd.f32 %v1095_v23, %v909_v43  ;;  %v1097_v1 = vpop.f32.mrb[6].mxu1 }
 0x20a   : > { %v1146_v28 = vmax.f32 %v1094_v16, 0.0  ;;  %v1098_v19 = vpop.f32.mrb[7].mxu1 }
 0x20b   : > { %v1147_v33 = vmax.f32 %v1096_v39, 0.0  ;;  %v1134_v41 = vpop.f32.mrb[8].mxu0 }
 0x20c   : > { %v1135_v51 = vadd.f32 %v1134_v41, %v909_v43  ;;  %v1298_v42 = vpop.f32.mrb[9].mxu0 }
 0x20d   : > { %v1287_v50 = vpack.c.bf16 %v1147_v33, %v1146_v28  ;;  %v1137_v55 = vpop.f32.mrb[10].mxu0 }
 0x20e   : > { %v1148_v46 = vmax.f32 %v1135_v51, 0.0  ;;  %v1299_v32 = vpop.f32.mrb[11].mxu0 }
 0x20f   : > { %1189 = vst [vmem:[%s2203_s25 + $0x18] sm:$0xff] %v1287_v50 }
 0x210   : > { %v1288_v35 = vpack.c.bf16 %v1148_v46, %v1148_v46 }
 0x212   : > { %1191 = vst.msk [vmem:[%s2203_s25 + $0x20] sm:$0xf] %vm1190_vm9, %v1288_v35 }
 0x213   : > { %1394 = shalt.err (!%p1391_p3)
}
 0x214   : > { %s1395_s8 = scalar_lea.hbm %s2214_s30, 576  ;;  %s1399_s11 = scalar_lea.hbm %s2262_s3, 2304 }
 0x215   : > { %p1396_p4 = scmp.ne.s32.totalorder %s2214_s30, %s1395_s8  ;;  %p1400_p9 = scmp.lt.u32.totalorder %s2214_s30, %s2262_s3 }
 0x216   : > { %p1401_p10 = scmp.lt.u32.totalorder %s1399_s11, %s1395_s8  ;;  %p1403_p12 = scmp.lt.u32.totalorder %s1395_s8, %s2214_s30 }
 0x217   : > { %p1397_p7 = pnand %p1396_p4, %p1517_p5 }
 0x218   : > { %p1402_p11 = por %p1401_p10, %p1400_p9 }
 0x219   : > { %p1398_p8 = pneg %p1397_p7 }
 0x21a   : > { %p1404_p13 = por %p1403_p12, %p1402_p11 }
 0x21c   : > { %p1405_p0 = pnand %p1404_p13, %p1398_p8 }
 0x21e   : > { %1408 = shalt.err (!%p1405_p0)
}
 0x21f   : > { %1303 = dma.vmem_to_hbm [thread:$0]  (%p1517_p5), %s2216_s27, 576, %s2214_s30, %s1193_s16  }
 0x220 PF: > { %p1309_p1 = scmp.ge.s32.totalorder %s1443_s15, 2  ;;  %s1219_s20 = sand.u32 1, %s1431_s12  }
 0x221   : > { %s1220_s24 = scalar_lea.sflag [#allocation3], %s1219_s20 }
 0x222   : > { %p1306_p2 = pnand %p1309_p1, %p1521_p6 }
 0x224   : > { %1426 = dma.done.wait (!%p1306_p2), %s1220_s24, 576  }
 0x225   : > { %1428 = vsyncadd (!%p1306_p2), %s1220_s24, 4294966720  ;;  %p13_p3 = scmp.ge.s32.totalorder %s1504_s18, 6   ;;  %s2299_s12 = smov %s1435_s13 }
 0x226   : > { %s2300_s13 = smov %s1439_s14  ;;  %s2301_s14 = smov %s1515_s21 }
 0x227   : > { %s2302_s15 = smov %s1504_s18  ;;  %15 = sbr.rel (!%p13_p3) target bundleno = 3 (0x3), region = 67 }
 0x22e   :  { %1225 = vsyncpa [#allocation3], 1 }
 0x22f   :  { %1227 = vsyncpa [#allocation3 + $0x1], 1 }

</bundles_post_ra>
